<compile_context>
chip_gen: v7x
topology: tpu7x:2x2x1
jax: 0.10.0
libtpu: 0.0.40
codegen_flags: <defaults>
</compile_context>

<pallas_src>
from functools import partial

import numpy as np
import jax
import jax.numpy as jnp
from jax import lax
from jax.experimental import pallas as pl
from jax.experimental.pallas import tpu as pltpu


def _round_up(x, m):
    return (x + m - 1) // m * m


# -----------------------------------------------------------------------------
# Pallas kernels
# -----------------------------------------------------------------------------

def _conv_matmul_kernel(a_ref, s_ref, t_ref, b_ref, o_ref, acc_ref, *, apply_relu):
    """out = [relu](a * scale_k + shift_k) @ b, bf16 operands, fp32 accumulation.

    scale_k / shift_k are per-K-column vectors (eval-mode BatchNorm of the conv *input*,
    tiled across kernel taps), delivered as (1, tk) blocks keyed on the k grid axis.
    """
    @pl.when(pl.program_id(2) == 0)
    def _():
        acc_ref[...] = jnp.zeros_like(acc_ref)

    a = a_ref[...].astype(jnp.float32) * s_ref[...] + t_ref[...]
    if apply_relu:
        a = jnp.maximum(a, 0.0)
    acc_ref[...] += jnp.dot(a.astype(jnp.bfloat16), b_ref[...],
                            preferred_element_type=jnp.float32)

    @pl.when(pl.program_id(2) == pl.num_programs(2) - 1)
    def _():
        o_ref[...] = acc_ref[...].astype(o_ref.dtype)


def _bn_relu_kernel(x_ref, s_ref, t_ref, o_ref):
    # eval-mode BatchNorm folded into per-channel scale/shift, fused with ReLU (fp32 math).
    y = jnp.maximum(x_ref[...].astype(jnp.float32) * s_ref[...] + t_ref[...], 0.0)
    o_ref[...] = y.astype(o_ref.dtype)


def _linear_sigmoid_kernel(x_ref, w_ref, b_ref, o_ref):
    y = jnp.dot(x_ref[...], w_ref[...], preferred_element_type=jnp.float32) + b_ref[...]
    o_ref[...] = 1.0 / (1.0 + jnp.exp(-y))


# -----------------------------------------------------------------------------
# Pallas wrappers
# -----------------------------------------------------------------------------

@partial(jax.jit, static_argnames=("cout", "apply_relu"))
def conv_matmul_pallas(a, w_p, scale_p, shift_p, *, cout, apply_relu=True):
    """(M, K) x pre-padded bf16 (Kp, Np) weight -> (M, cout), BN+ReLU fused on A."""
    M, K = a.shape
    Kp, Np = w_p.shape

    # Row tiling: single block up to 512 rows; otherwise 256-row tiles.
    if M <= 512:
        tm = _round_up(M, 8)
        Mp = tm
    else:
        tm = 256
        Mp = _round_up(M, tm)
    # K tiling: largest of these that divides the (128-multiple) padded K.
    tk = Kp
    for cand in (512, 384, 256, 128):
        if Kp % cand == 0:
            tk = cand
            break
    # N tiling.
    tn = 256 if Np % 256 == 0 else 128

    ap = jnp.pad(a, ((0, Mp - M), (0, Kp - K)))

    out = pl.pallas_call(
        partial(_conv_matmul_kernel, apply_relu=apply_relu),
        out_shape=jax.ShapeDtypeStruct((Mp, Np), jnp.bfloat16),
        grid=(Mp // tm, Np // tn, Kp // tk),
        in_specs=[
            pl.BlockSpec((tm, tk), lambda i, j, k: (i, k)),
            pl.BlockSpec((1, tk), lambda i, j, k: (0, k)),
            pl.BlockSpec((1, tk), lambda i, j, k: (0, k)),
            pl.BlockSpec((tk, tn), lambda i, j, k: (k, j)),
        ],
        out_specs=pl.BlockSpec((tm, tn), lambda i, j, k: (i, j)),
        scratch_shapes=[pltpu.VMEM((tm, tn), jnp.float32)],
        compiler_params=pltpu.CompilerParams(
            dimension_semantics=("parallel", "parallel", "arbitrary")),
    )(ap, scale_p, shift_p, w_p)
    return out[:M, :cout]


@jax.jit
def bn_relu_pallas(x2d, scale, shift):
    """y = max(x * scale + shift, 0) on a (rows, channels) slab, row-tiled grid."""
    M, C = x2d.shape
    Cp = _round_up(C, 128)
    tr = min(1024, _round_up(M, 8))
    Mp = _round_up(M, tr)
    xp = jnp.pad(x2d, ((0, Mp - M), (0, Cp - C)))
    sp = jnp.pad(scale, (0, Cp - C)).reshape(1, Cp)
    tp = jnp.pad(shift, (0, Cp - C)).reshape(1, Cp)
    out = pl.pallas_call(
        _bn_relu_kernel,
        out_shape=jax.ShapeDtypeStruct((Mp, Cp), jnp.bfloat16),
        grid=(Mp // tr,),
        in_specs=[
            pl.BlockSpec((tr, Cp), lambda i: (i, 0)),
            pl.BlockSpec((1, Cp), lambda i: (0, 0)),
            pl.BlockSpec((1, Cp), lambda i: (0, 0)),
        ],
        out_specs=pl.BlockSpec((tr, Cp), lambda i: (i, 0)),
        compiler_params=pltpu.CompilerParams(dimension_semantics=("parallel",)),
    )(xp, sp, tp)
    return out[:M, :C]


@jax.jit
def linear_sigmoid_pallas(x, w, b):
    """sigmoid(x @ w + b): the replaced DenseNet121 classifier head (kept fp32; tiny)."""
    M, K = x.shape
    K2, N = w.shape
    assert K == K2
    Mp, Np = _round_up(M, 8), _round_up(N, 128)
    xp = jnp.pad(x.astype(jnp.float32), ((0, Mp - M), (0, 0)))
    wp = jnp.pad(w, ((0, 0), (0, Np - N)))
    bp = jnp.pad(b, (0, Np - N)).reshape(1, Np)
    out = pl.pallas_call(
        _linear_sigmoid_kernel,
        out_shape=jax.ShapeDtypeStruct((Mp, Np), jnp.float32),
    )(xp, wp, bp)
    return out[:M, :N]


# -----------------------------------------------------------------------------
# Glue: conv (BN+ReLU fused into the matmul), pooling (plain-JAX around Pallas)
# -----------------------------------------------------------------------------

def conv2d_fused(x_nhwc, conv, stride, pad, apply_relu=True):
    """relu(BN(x)) -> Conv2d(bias=False), with BN+ReLU fused into the Pallas matmul.

    conv holds: pre-padded bf16 weight (Kp, Np), pre-tiled/padded BN scale_k/shift_k (1, Kp).
    """
    kh, kw, cout = conv["kh"], conv["kw"], conv["cout"]
    N, H, W, C = x_nhwc.shape
    if kh == 1 and kw == 1 and stride == 1 and pad == 0:
        # 1x1 conv: A is just the NHWC slab reshaped (free); no im2col materialization.
        a = x_nhwc.reshape(N * H * W, C)
        oh, ow = H, W
    else:
        # TODO(synk): 3x3/7x7 convs still materialize (bf16) im2col patches in HBM; a
        # tap-indexed direct conv (shifted-matmul grid axis) would cut this further.
        xp = jnp.pad(x_nhwc, ((0, 0), (pad, pad), (pad, pad), (0, 0)))
        _, Hp2, Wp2, _ = xp.shape
        oh = (Hp2 - kh) // stride + 1
        ow = (Wp2 - kw) // stride + 1
        cols = []
        for i in range(kh):
            for j in range(kw):
                cols.append(xp[:, i:i + (oh - 1) * stride + 1:stride,
                                  j:j + (ow - 1) * stride + 1:stride, :])
        a = jnp.concatenate(cols, axis=-1).reshape(N * oh * ow, kh * kw * C)
    y = conv_matmul_pallas(a, conv["w"], conv["scale_k"], conv["shift_k"],
                           cout=cout, apply_relu=apply_relu)
    return y.reshape(N, oh, ow, cout)


def bn_relu(x_nhwc, bn):
    N, H, W, C = x_nhwc.shape
    y = bn_relu_pallas(x_nhwc.reshape(N * H * W, C), bn["scale"], bn["shift"])
    return y.reshape(N, H, W, C)


def max_pool_3x3_s2_p1(x):
    # TODO(synk): pooling runs as plain-JAX reduce_window glue, not a Pallas kernel.
    return lax.reduce_window(
        x, jnp.array(-jnp.inf, dtype=x.dtype), lax.max,
        window_dimensions=(1, 3, 3, 1), window_strides=(1, 2, 2, 1),
        padding=((0, 0), (1, 1), (1, 1), (0, 0)))


def avg_pool_2x2(x):
    N, H, W, C = x.shape
    y = x.reshape(N, H // 2, 2, W // 2, 2, C).astype(jnp.float32).mean(axis=(2, 4))
    return y.astype(x.dtype)


# -----------------------------------------------------------------------------
# DenseNet-121 parameters (deterministic synthetic init; weights + folded BN are
# reshaped / padded / cast to matmul-ready form ONCE here, not per forward).
# -----------------------------------------------------------------------------

GROWTH_RATE = 32
BLOCK_CONFIG = (6, 12, 24, 16)
NUM_INIT_FEATURES = 64
BN_SIZE = 4
BN_EPS = 1e-5


def _bn_scale_shift(key, c):
    kg, kb = jax.random.split(key)
    gamma = 1.0 + 0.05 * jax.random.normal(kg, (c,), jnp.float32)
    beta = 0.05 * jax.random.normal(kb, (c,), jnp.float32)
    running_mean = jnp.zeros((c,), jnp.float32)
    running_var = jnp.ones((c,), jnp.float32)
    # TODO(synk): eval-mode BatchNorm (running statistics); training-mode batch stats not implemented.
    scale = gamma / jnp.sqrt(running_var + BN_EPS)
    shift = beta - running_mean * scale
    return scale, shift


def _prep_conv(key, cin, cout, kh, kw, scale=None, shift=None):
    """He-init HWIO conv weight, flattened to (kh*kw*cin, cout), padded to 128-multiples,
    cast to bf16. The preceding BN's scale/shift are tiled across taps and padded too."""
    fan_in = cin * kh * kw
    w = jax.random.normal(key, (kh, kw, cin, cout), jnp.float32) * np.sqrt(2.0 / fan_in)
    K = kh * kw * cin
    Kp, Np = _round_up(K, 128), _round_up(cout, 128)
    w2 = jnp.pad(w.reshape(K, cout), ((0, Kp - K), (0, Np - cout))).astype(jnp.bfloat16)
    if scale is None:  # no BN in front of this conv (conv0): identity scale/shift
        sk = jnp.ones((1, Kp), jnp.float32)
        tk = jnp.zeros((1, Kp), jnp.float32)
    else:
        sk = jnp.pad(jnp.tile(scale, kh * kw), (0, Kp - K)).reshape(1, Kp)
        tk = jnp.pad(jnp.tile(shift, kh * kw), (0, Kp - K)).reshape(1, Kp)
    return {"w": w2, "scale_k": sk, "shift_k": tk, "kh": kh, "kw": kw, "cout": cout}


def init_densenet121_params(key, class_count=7):
    counter = [0]

    def nk():
        counter[0] += 1
        return jax.random.fold_in(key, counter[0])

    params = {"blocks": [], "transitions": []}
    params["conv0"] = _prep_conv(nk(), 3, NUM_INIT_FEATURES, 7, 7)
    s0, t0 = _bn_scale_shift(nk(), NUM_INIT_FEATURES)
    params["norm0"] = {"scale": s0, "shift": t0}

    c = NUM_INIT_FEATURES
    for bi, n_layers in enumerate(BLOCK_CONFIG):
        layers = []
        for li in range(n_layers):
            cin = c + li * GROWTH_RATE
            s1, t1 = _bn_scale_shift(nk(), cin)
            conv1 = _prep_conv(nk(), cin, BN_SIZE * GROWTH_RATE, 1, 1, s1, t1)
            s2, t2 = _bn_scale_shift(nk(), BN_SIZE * GROWTH_RATE)
            conv2 = _prep_conv(nk(), BN_SIZE * GROWTH_RATE, GROWTH_RATE, 3, 3, s2, t2)
            layers.append({"conv1": conv1, "conv2": conv2})
        params["blocks"].append(layers)
        c += n_layers * GROWTH_RATE
        if bi != len(BLOCK_CONFIG) - 1:
            st, tt = _bn_scale_shift(nk(), c)
            params["transitions"].append({"conv": _prep_conv(nk(), c, c // 2, 1, 1, st, tt)})
            c //= 2

    s5, t5 = _bn_scale_shift(nk(), c)          # c == 1024 (classifier.in_features)
    params["norm5"] = {"scale": s5, "shift": t5}
    params["fc_w"] = jax.random.normal(nk(), (c, class_count), jnp.float32) / np.sqrt(c)
    params["fc_b"] = jnp.zeros((class_count,), jnp.float32)
    return params


# -----------------------------------------------------------------------------
# Forward pass (matches torchvision densenet121 + replaced classifier)
# -----------------------------------------------------------------------------

def densenet121_forward(params, x_nchw):
    # NCHW fp32 -> NHWC bf16 (activations carried in bf16; matmul accumulates in fp32).
    x = jnp.transpose(x_nchw.astype(jnp.float32), (0, 2, 3, 1)).astype(jnp.bfloat16)

    # Stem: conv0 (no BN in front, no ReLU on inputs) -> norm0+relu0 -> pool0
    x = conv2d_fused(x, params["conv0"], stride=2, pad=3, apply_relu=False)
    x = bn_relu(x, params["norm0"])
    x = max_pool_3x3_s2_p1(x)

    # Dense blocks + transitions. Every layer's BN+ReLU is fused into its conv matmul.
    for bi, layers in enumerate(params["blocks"]):
        feats = x
        for layer in layers:
            h = conv2d_fused(feats, layer["conv1"], stride=1, pad=0)   # norm1+relu1+1x1 conv
            h = conv2d_fused(h, layer["conv2"], stride=1, pad=1)       # norm2+relu2+3x3 conv
            # TODO(synk): per-layer concat copies the growing feature map (O(L^2) HBM);
            # a preallocated channel slab written via out_spec offsets would remove it.
            feats = jnp.concatenate([feats, h], axis=-1)
        x = feats
        if bi != len(params["blocks"]) - 1:
            t = params["transitions"][bi]
            x = conv2d_fused(x, t["conv"], stride=1, pad=0)            # norm+relu+1x1 conv
            x = avg_pool_2x2(x)

    # norm5 + the final F.relu from torchvision's DenseNet.forward, fused.
    x = bn_relu(x, params["norm5"])
    x = x.astype(jnp.float32).mean(axis=(1, 2))     # adaptive_avg_pool2d((1,1)) + flatten
    # Replaced classifier: Linear(1024, 7) + Sigmoid (fused Pallas kernel).
    return linear_sigmoid_pallas(x, params["fc_w"], params["fc_b"])


if __name__ == "__main__":
    key = jax.random.PRNGKey(0)
    k_params, k_x = jax.random.split(key)
    params = init_densenet121_params(k_params, class_count=7)
    # Small input consistent with the module: NCHW, 3 channels, 32x32 spatial.
    x = jax.random.normal(k_x, (2, 3, 32, 32), jnp.float32)
    out = densenet121_forward(params, x)
    out = jax.block_until_ready(out)
    assert out.shape == (2, 7), out.shape
    assert bool(jnp.all(jnp.isfinite(out))), "non-finite output"
    assert bool(jnp.all((out >= 0.0) & (out <= 1.0))), "sigmoid range violated"
    print("KERNEL_OK")
</pallas_src>

<mosaic_0001>
module attributes {stable_mosaic.version = 11 : i64} {
  func.func @_conv_matmul_kernel(%arg0: i32, %arg1: i32, %arg2: i32, %arg3: memref<512x256xbf16, #tpu.memory_space<vmem>>, %arg4: memref<1x256xf32, #tpu.memory_space<vmem>>, %arg5: memref<1x256xf32, #tpu.memory_space<vmem>>, %arg6: memref<256x128xbf16, #tpu.memory_space<vmem>>, %arg7: memref<512x128xbf16, #tpu.memory_space<vmem>>, %arg8: memref<512x128xf32, #tpu.memory_space<vmem>>) attributes {dimension_semantics = [#tpu.dimension_semantics<parallel>, #tpu.dimension_semantics<parallel>, #tpu.dimension_semantics<arbitrary>], iteration_bounds = array<i64: 1, 1, 1>, scalar_prefetch = 0 : i64, scratch_operands = 1 : i64, tpu.core_type = #tpu.core_type<tc>, window_params = [{transform_indices = @transform_0, window_bounds = array<i64: 512, 256>}, {transform_indices = @transform_1, window_bounds = array<i64: 1, 256>}, {transform_indices = @transform_2, window_bounds = array<i64: 1, 256>}, {transform_indices = @transform_3, window_bounds = array<i64: 256, 128>}, {transform_indices = @transform_4, window_bounds = array<i64: 512, 128>}]} {
    %c0_i32 = arith.constant 0 : i32
    %0 = arith.cmpi eq, %arg2, %c0_i32 : i32
    %1 = arith.extui %0 : i1 to i32
    %c0_i32_0 = arith.constant 0 : i32
    %2 = arith.cmpi ne, %1, %c0_i32_0 : i32
    scf.if %2 {
      %cst_14 = arith.constant 0.000000e+00 : f32
      %20 = vector.broadcast %cst_14 : f32 to vector<512x128xf32>
      %c0_15 = arith.constant 0 : index
      %c0_16 = arith.constant 0 : index
      %21 = vector.load %arg8[%c0_15, %c0_16] : memref<512x128xf32, #tpu.memory_space<vmem>>, vector<512x128xf32>
      tpu.vector_store %arg8[%c0_15, %c0_16], %20 {strides = array<i32>} : memref<512x128xf32, #tpu.memory_space<vmem>>, vector<512x128xf32>,
    } else {
    }
    %c0 = arith.constant 0 : index
    %c0_1 = arith.constant 0 : index
    %3 = vector.load %arg3[%c0, %c0_1] : memref<512x256xbf16, #tpu.memory_space<vmem>>, vector<512x256xbf16>
    %4 = arith.extf %3 : vector<512x256xbf16> to vector<512x256xf32>
    %c0_2 = arith.constant 0 : index
    %c0_3 = arith.constant 0 : index
    %5 = vector.load %arg4[%c0_2, %c0_3] : memref<1x256xf32, #tpu.memory_space<vmem>>, vector<1x256xf32>
    %6 = vector.broadcast %5 : vector<1x256xf32> to vector<512x256xf32>
    %7 = arith.mulf %4, %6 : vector<512x256xf32>
    %c0_4 = arith.constant 0 : index
    %c0_5 = arith.constant 0 : index
    %8 = vector.load %arg5[%c0_4, %c0_5] : memref<1x256xf32, #tpu.memory_space<vmem>>, vector<1x256xf32>
    %9 = vector.broadcast %8 : vector<1x256xf32> to vector<512x256xf32>
    %10 = arith.addf %7, %9 : vector<512x256xf32>
    %c0_6 = arith.constant 0 : index
    %c0_7 = arith.constant 0 : index
    %11 = vector.load %arg8[%c0_6, %c0_7] : memref<512x128xf32, #tpu.memory_space<vmem>>, vector<512x128xf32>
    %12 = arith.truncf %10 : vector<512x256xf32> to vector<512x256xbf16>
    %c0_8 = arith.constant 0 : index
    %c0_9 = arith.constant 0 : index
    %13 = vector.load %arg6[%c0_8, %c0_9] : memref<256x128xbf16, #tpu.memory_space<vmem>>, vector<256x128xbf16>
    %cst = arith.constant dense<0.000000e+00> : vector<512x128xf32>
    %14 = tpu.matmul %12, %13, %cst {dimension_numbers = #tpu.dot_dimension_numbers<[1], [0], [0], [1], [0, 0, 1, 1], [], []>} : vector<512x256xbf16>, vector<256x128xbf16>, vector<512x128xf32> -> vector<512x128xf32>
    %15 = arith.addf %11, %14 : vector<512x128xf32>
    %c0_10 = arith.constant 0 : index
    %c0_11 = arith.constant 0 : index
    %16 = vector.load %arg8[%c0_10, %c0_11] : memref<512x128xf32, #tpu.memory_space<vmem>>, vector<512x128xf32>
    tpu.vector_store %arg8[%c0_10, %c0_11], %15 {strides = array<i32>} : memref<512x128xf32, #tpu.memory_space<vmem>>, vector<512x128xf32>,
    %c0_i32_12 = arith.constant 0 : i32
    %17 = arith.cmpi eq, %arg2, %c0_i32_12 : i32
    %18 = arith.extui %17 : i1 to i32
    %c0_i32_13 = arith.constant 0 : i32
    %19 = arith.cmpi ne, %18, %c0_i32_13 : i32
    scf.if %19 {
      %c0_14 = arith.constant 0 : index
      %c0_15 = arith.constant 0 : index
      %20 = vector.load %arg8[%c0_14, %c0_15] : memref<512x128xf32, #tpu.memory_space<vmem>>, vector<512x128xf32>
      %21 = arith.truncf %20 : vector<512x128xf32> to vector<512x128xbf16>
      %c0_16 = arith.constant 0 : index
      %c0_17 = arith.constant 0 : index
      %22 = vector.load %arg7[%c0_16, %c0_17] : memref<512x128xbf16, #tpu.memory_space<vmem>>, vector<512x128xbf16>
      tpu.vector_store %arg7[%c0_16, %c0_17], %21 {strides = array<i32>} : memref<512x128xbf16, #tpu.memory_space<vmem>>, vector<512x128xbf16>,
    } else {
    }
    return
  }
  func.func @transform_0(%arg0: i32, %arg1: i32, %arg2: i32) -> (i32, i32) {
    %c0_i32 = arith.constant 0 : i32
    return %arg0, %arg2 : i32, i32
  }
  func.func @transform_1(%arg0: i32, %arg1: i32, %arg2: i32) -> (i32, i32) {
    %c0_i32 = arith.constant 0 : i32
    %c0_i32_0 = arith.constant 0 : i32
    return %c0_i32, %arg2 : i32, i32
  }
  func.func @transform_2(%arg0: i32, %arg1: i32, %arg2: i32) -> (i32, i32) {
    %c0_i32 = arith.constant 0 : i32
    %c0_i32_0 = arith.constant 0 : i32
    return %c0_i32, %arg2 : i32, i32
  }
  func.func @transform_3(%arg0: i32, %arg1: i32, %arg2: i32) -> (i32, i32) {
    %c0_i32 = arith.constant 0 : i32
    return %arg2, %arg1 : i32, i32
  }
  func.func @transform_4(%arg0: i32, %arg1: i32, %arg2: i32) -> (i32, i32) {
    %c0_i32 = arith.constant 0 : i32
    return %arg0, %arg1 : i32, i32
  }
}

</mosaic_0001>

<bundles_post_ra>
// kernel: conv_matmul_pallas.1
= control target key start
LH: loop header
LB: loop body
LE: loop exit
PB: predicated region body
PF: predicated region fallthrough
CT: control target
= control target key end

     0   :  { %v2006_v0 = vmov 0   ;;  %v280_v4 = vlaneseq  ;;  %s2710_s3 = inlined_call_operand.vmem [shape: bf16[256,128], index: 3, kind: input, shape index: {}]   ;;  %s2711_s0 = inlined_call_operand.vmem [shape: bf16[512,256], index: 0, kind: input, shape index: {}]   ;;  %s2712_s1 = inlined_call_operand.vmem [shape: f32[1,256], index: 1, kind: input, shape index: {}]   ;;  %s2713_s2 = inlined_call_operand.vmem [shape: f32[1,256], index: 2, kind: input, shape index: {}]   ;;  %s2714_s4 = inlined_call_operand.vmem [shape: bf16[512,128], index: 4, kind: output, shape index: {}]  }
   0x1   :  { %814 = vmatprep.subr.bf16.mxu0 %v2006_v0  ;;  %1957 = vmatprep.subr.bf16.mxu1 %v2006_v0  ;;  %v1990_v1 = vld [vmem:[%s2710_s3] sm:$0xff]   ;;  %v1991_v2 = vld [vmem:[%s2710_s3 + $0x8] sm:$0xff]   ;;  %v1992_v3 = vld [vmem:[%s2710_s3 + $0x10] sm:$0xff]  }
   0x2   :  { %815 = vmatpush1.bf16.msra.mxu0 %v1990_v1  ;;  %1973 = vmatpush1.bf16.msra.mxu1 %v1990_v1  ;;  %v1993_v5 = vld [vmem:[%s2710_s3 + $0x18] sm:$0xff]   ;;  %v2050_v6 = vshrl.u32 %v280_v4, 7  ;;  %v1994_v7 = vld [vmem:[%s2710_s3 + $0x20] sm:$0xff]   ;;  %v2068_v10 = vld [vmem:[%s2711_s0 + $0x8] sm:$0xff] }
   0x3   :  { %816 = vmatprep.subr.bf16.mxu0 %v2006_v0  ;;  %1958 = vmatprep.subr.bf16.mxu1 %v2006_v0  ;;  %v2063_v9 = vld [vmem:[%s2711_s0] sm:$0xff]  ;;  %v153_v13 = vunpack.c.h.bf16 %v2068_v10  ;;  %v2090_v16 = vld [vmem:[%s2711_s0 + $0x108] sm:$0xff]  ;;  %v1996_v26 = vld [vmem:[%s2710_s3 + $0x30] sm:$0xff]   ;;  %v152_v46 = vunpack.c.l.bf16 %v2068_v10 }
   0x4   :  { %v286_v8 = vsub.s32 1, %v2050_v6  ;;  %v2073_v11 = vld [vmem:[%s2712_s1] sm:$0x3]  ;;  %v151_v12 = vunpack.c.h.bf16 %v2063_v9  ;;  %v1995_v17 = vld [vmem:[%s2710_s3 + $0x28] sm:$0xff]   ;;  %v217_v21 = vunpack.c.h.bf16 %v2090_v16  ;;  %v1997_v33 = vld [vmem:[%s2710_s3 + $0x38] sm:$0xff]   ;;  %v282_v38 = vsub.s32 0, %v2050_v6 }
   0x5   :  { %v2080_v14 = vld [vmem:[%s2713_s2] sm:$0x3]  ;;  %v1999_v35 = vld [vmem:[%s2710_s3 + $0x48] sm:$0xff]   ;;  %v2000_v36 = vld [vmem:[%s2710_s3 + $0x50] sm:$0xff]   ;;  %v150_v41 = vunpack.c.l.bf16 %v2063_v9  ;;  %v216_v48 = vunpack.c.l.bf16 %v2090_v16 }
   0x6   :  { %817 = vmatpush1.bf16.msra.mxu0 %v1991_v2  ;;  %1974 = vmatpush1.bf16.msra.mxu1 %v1991_v2  ;;  %v2085_v15 = vld [vmem:[%s2711_s0 + $0x100] sm:$0xff]  ;;  %v2096_v18 = vrot.slane %v2073_v11, %v286_v8  ;;  %v2101_v19 = vrot.slane %v2080_v14, %v286_v8  ;;  %v2001_v37 = vld [vmem:[%s2710_s3 + $0x58] sm:$0xff]   ;;  %v88_v40 = vld [vmem:[%s2711_s0 + $0x10] sm:$0xff]  ;;  %v2154_v42 = vrot.slane %v2073_v11, %v282_v38 }
   0x7   :  { %818 = vmatprep.subr.bf16.mxu0 %v2006_v0  ;;  %1959 = vmatprep.subr.bf16.mxu1 %v2006_v0  ;;  %v215_v20 = vunpack.c.h.bf16 %v2085_v15  ;;  %v1998_v34 = vld [vmem:[%s2710_s3 + $0x40] sm:$0xff]   ;;  %v89_v43 = vld [vmem:[%s2711_s0 + $0x18] sm:$0xff]  ;;  %v120_v44 = vld [vmem:[%s2711_s0 + $0x110] sm:$0xff]  ;;  %v214_v47 = vunpack.c.l.bf16 %v2085_v15  ;;  %v155_v49 = vunpack.c.h.bf16 %v88_v40  ;;  %v2174_v54 = vrot.slane %v2080_v14, %v282_v38 }
   0x8   :  { %v291_v22 = vmul.f32 %v2096_v18, %v151_v12  ;;  %v293_v23 = vmul.f32 %v2096_v18, %v153_v13  ;;  %v357_v25 = vmul.f32 %v2096_v18, %v217_v21  ;;  %v2002_v39 = vld [vmem:[%s2710_s3 + $0x60] sm:$0xff]   ;;  %v121_v45 = vld [vmem:[%s2711_s0 + $0x118] sm:$0xff]  ;;  %v2003_v50 = vld [vmem:[%s2710_s3 + $0x68] sm:$0xff]   ;;  %v157_v51 = vunpack.c.h.bf16 %v89_v43 }
   0x9   :  { %v355_v24 = vmul.f32 %v2096_v18, %v215_v20  ;;  %v219_v52 = vunpack.c.h.bf16 %v120_v44  ;;  %v221_v53 = vunpack.c.h.bf16 %v121_v45  ;;  %v290_v55 = vmul.f32 %v2154_v42, %v150_v41  ;;  %v2004_v59 = vld [vmem:[%s2710_s3 + $0x70] sm:$0xff]   ;;  %v2190_v1 = vld [vmem:[%s2711_s0 + $0x20] sm:$0xff]  ;;  %v2195_v2 = vld [vmem:[%s2711_s0 + $0x28] sm:$0xff] }
   0xa   :  { %819 = vmatpush1.bf16.msra.mxu0 %v1992_v3  ;;  %1975 = vmatpush1.bf16.msra.mxu1 %v1992_v3  ;;  %v431_v27 = vadd.f32 %v2101_v19, %v291_v22  ;;  %v433_v28 = vadd.f32 %v2101_v19, %v293_v23  ;;  %v497_v30 = vadd.f32 %v2101_v19, %v357_v25  ;;  %v2200_v3 = vld [vmem:[%s2711_s0 + $0x120] sm:$0xff]  ;;  %v156_v6 = vunpack.c.l.bf16 %v89_v43  ;;  %v123_v8 = vld [vmem:[%s2711_s0 + $0x128] sm:$0xff]  ;;  %v124_v41 = vld [vmem:[%s2711_s0 + $0x130] sm:$0xff] }
   0xb   :  { %820 = vmatprep.subr.bf16.mxu0 %v2006_v0  ;;  %1960 = vmatprep.subr.bf16.mxu1 %v2006_v0  ;;  %v495_v29 = vadd.f32 %v2101_v19, %v355_v24  ;;  %v292_v56 = vmul.f32 %v2154_v42, %v152_v46  ;;  %v354_v57 = vmul.f32 %v2154_v42, %v214_v47  ;;  %v220_v12 = vunpack.c.l.bf16 %v121_v45  ;;  %v125_v43 = vld [vmem:[%s2711_s0 + $0x138] sm:$0xff] }
   0xc   :  { %v623_v31 = vpack.c.bf16 %v433_v28, %v431_v27  ;;  %v356_v58 = vmul.f32 %v2154_v42, %v216_v48  ;;  %v295_v60 = vmul.f32 %v2096_v18, %v155_v49  ;;  %v297_v61 = vmul.f32 %v2096_v18, %v157_v51 }
   0xd   :  { %v655_v32 = vpack.c.bf16 %v497_v30, %v495_v29  ;;  %v359_v62 = vmul.f32 %v2096_v18, %v219_v52  ;;  %v361_v63 = vmul.f32 %v2096_v18, %v221_v53  ;;  %v430_v4 = vadd.f32 %v2174_v54, %v290_v55 }
   0xe   :  { %821 = vmatpush1.bf16.msra.mxu0 %v1993_v5  ;;  %1976 = vmatpush1.bf16.msra.mxu1 %v1993_v5  ;;  %v154_v5 = vunpack.c.l.bf16 %v88_v40  ;;  %v432_v9 = vadd.f32 %v2174_v54, %v292_v56  ;;  %v494_v10 = vadd.f32 %v2174_v54, %v354_v57  ;;  %v496_v11 = vadd.f32 %v2174_v54, %v356_v58  ;;  %v93_v40 = vld [vmem:[%s2711_s0 + $0x38] sm:$0xff] }
   0xf   :  { %822 = vmatprep.subr.bf16.mxu0 %v2006_v0  ;;  %1961 = vmatprep.subr.bf16.mxu1 %v2006_v0  ;;  %v435_v13 = vadd.f32 %v2101_v19, %v295_v60  ;;  %v159_v14 = vunpack.c.h.bf16 %v2190_v1  ;;  %v161_v15 = vunpack.c.h.bf16 %v2195_v2  ;;  %v223_v16 = vunpack.c.h.bf16 %v2200_v3 }
  0x10   :  { %846 = vmatprep.mubr.bf16.mxu0 %v623_v31  ;;  %974 = vmatprep.mubr.bf16.mxu1 %v655_v32  ;;  %v437_v20 = vadd.f32 %v2101_v19, %v297_v61  ;;  %v499_v21 = vadd.f32 %v2101_v19, %v359_v62  ;;  %v501_v22 = vadd.f32 %v2101_v19, %v361_v63  ;;  %v225_v23 = vunpack.c.h.bf16 %v123_v8 }
  0x11   :  { %v294_v24 = vmul.f32 %v2154_v42, %v154_v5  ;;  %v296_v25 = vmul.f32 %v2154_v42, %v156_v6  ;;  %v622_v27 = vpack.c.bf16 %v432_v9, %v430_v4  ;;  %v360_v28 = vmul.f32 %v2154_v42, %v220_v12  ;;  %v94_v6 = vld [vmem:[%s2711_s0 + $0x40] sm:$0xff] }
  0x12   :  { %823 = vmatpush1.bf16.msra.mxu0 %v1994_v7  ;;  %1977 = vmatpush1.bf16.msra.mxu1 %v1994_v7  ;;  %v218_v7 = vunpack.c.l.bf16 %v120_v44  ;;  %v654_v29 = vpack.c.bf16 %v496_v11, %v494_v10  ;;  %v299_v30 = vmul.f32 %v2096_v18, %v159_v14  ;;  %v301_v31 = vmul.f32 %v2096_v18, %v161_v15 }
  0x13   :  { %824 = vmatprep.subr.bf16.mxu0 %v2006_v0  ;;  %1962 = vmatprep.subr.bf16.mxu1 %v2006_v0  ;;  %v363_v32 = vmul.f32 %v2096_v18, %v223_v16  ;;  %v500_v44 = vadd.f32 %v2174_v54, %v360_v28  ;;  %v160_v45 = vunpack.c.l.bf16 %v2195_v2  ;;  %v222_v46 = vunpack.c.l.bf16 %v2200_v3 }
  0x14   :  { %v224_v47 = vunpack.c.l.bf16 %v123_v8  ;;  %v439_v48 = vadd.f32 %v2101_v19, %v299_v30  ;;  %v441_v49 = vadd.f32 %v2101_v19, %v301_v31  ;;  %v165_v53 = vunpack.c.h.bf16 %v93_v40  ;;  %v126_v8 = vld [vmem:[%s2711_s0 + $0x140] sm:$0xff] }
  0x15   :  { %v227_v55 = vunpack.c.h.bf16 %v124_v41  ;;  %v229_v56 = vunpack.c.h.bf16 %v125_v43  ;;  %v300_v58 = vmul.f32 %v2154_v42, %v160_v45  ;;  %v164_v11 = vunpack.c.l.bf16 %v93_v40  ;;  %v97_v45 = vld [vmem:[%s2711_s0 + $0x58] sm:$0xff] }
  0x16   :  { %825 = vmatpush1.bf16.msra.mxu0 %v1995_v17  ;;  %1978 = vmatpush1.bf16.msra.mxu1 %v1995_v17  ;;  %v2005_v17 = vld [vmem:[%s2710_s3 + $0x78] sm:$0xff]   ;;  %v364_v60 = vmul.f32 %v2154_v42, %v224_v47  ;;  %v627_v63 = vpack.c.bf16 %v441_v49, %v439_v48  ;;  %v305_v3 = vmul.f32 %v2096_v18, %v165_v53  ;;  %v226_v12 = vunpack.c.l.bf16 %v124_v41 }
  0x17   :  { %826 = vmatprep.subr.bf16.mxu0 %v2006_v0  ;;  %1963 = vmatprep.subr.bf16.mxu1 %v2006_v0  ;;  %v367_v4 = vmul.f32 %v2096_v18, %v227_v55  ;;  %v369_v5 = vmul.f32 %v2096_v18, %v229_v56  ;;  %v440_v14 = vadd.f32 %v2174_v54, %v300_v58  ;;  %v129_v47 = vld [vmem:[%s2711_s0 + $0x158] sm:$0xff]  ;;  %v173_v58 = vunpack.c.h.bf16 %v97_v45 }
  0x18   :  { %v504_v16 = vadd.f32 %v2174_v54, %v364_v60  ;;  %v366_v30 = vmul.f32 %v2154_v42, %v226_v12  ;;  %v237_v60 = vunpack.c.h.bf16 %v129_v47  ;;  %v130_v12 = vld [vmem:[%s2711_s0 + $0x160] sm:$0xff] }
  0x1a   :  { %827 = vmatpush1.bf16.msra.mxu0 %v1996_v26  ;;  %1979 = vmatpush1.bf16.msra.mxu1 %v1996_v26  ;;  %v358_v26 = vmul.f32 %v2154_v42, %v218_v7  ;;  %v95_v7 = vld [vmem:[%s2711_s0 + $0x48] sm:$0xff] }
  0x1b   :  { %828 = vmatprep.subr.bf16.mxu0 %v2006_v0  ;;  %1964 = vmatprep.subr.bf16.mxu1 %v2006_v0  ;;  %v168_v49 = vunpack.c.l.bf16 %v95_v7 }
  0x1c   :  { %v498_v38 = vadd.f32 %v2174_v54, %v358_v26  ;;  %v509_v26 = vadd.f32 %v2101_v19, %v369_v5 }
  0x1e   :  { %829 = vmatpush1.bf16.msra.mxu0 %v1997_v33  ;;  %1980 = vmatpush1.bf16.msra.mxu1 %v1997_v33  ;;  %v625_v33 = vpack.c.bf16 %v437_v20, %v435_v13  ;;  %v656_v62 = vpack.c.bf16 %v500_v44, %v498_v38  ;;  %v127_v13 = vld [vmem:[%s2711_s0 + $0x148] sm:$0xff]  ;;  %v166_v44 = vunpack.c.l.bf16 %v94_v6 }
  0x1f   :  { %830 = vmatprep.subr.bf16.mxu0 %v2006_v0  ;;  %1965 = vmatprep.subr.bf16.mxu1 %v2006_v0 }
  0x22   :  { %831 = vmatpush1.bf16.msra.mxu0 %v1998_v34  ;;  %1981 = vmatpush1.bf16.msra.mxu1 %v1998_v34  ;;  %v365_v34 = vmul.f32 %v2096_v18, %v225_v23  ;;  %v231_v23 = vunpack.c.h.bf16 %v126_v8 }
  0x23   :  { %832 = vmatprep.subr.bf16.mxu0 %v2006_v0  ;;  %1966 = vmatprep.subr.bf16.mxu1 %v2006_v0 }
  0x24   :  { %v505_v52 = vadd.f32 %v2101_v19, %v365_v34 }
  0x26   :  { %833 = vmatpush1.bf16.msra.mxu0 %v1999_v35  ;;  %1982 = vmatpush1.bf16.msra.mxu1 %v1999_v35  ;;  %v92_v35 = vld [vmem:[%s2711_s0 + $0x30] sm:$0xff] }
  0x27   :  { %834 = vmatprep.subr.bf16.mxu0 %v2006_v0  ;;  %1967 = vmatprep.subr.bf16.mxu1 %v2006_v0  ;;  %v163_v51 = vunpack.c.h.bf16 %v92_v35  ;;  %v162_v10 = vunpack.c.l.bf16 %v92_v35  ;;  %v371_v35 = vmul.f32 %v2096_v18, %v231_v23  ;;  %v236_v23 = vunpack.c.l.bf16 %v129_v47 }
  0x29   :  { %v302_v28 = vmul.f32 %v2154_v42, %v162_v10  ;;  %v511_v55 = vadd.f32 %v2101_v19, %v371_v35  ;;  %v98_v10 = vld [vmem:[%s2711_s0 + $0x60] sm:$0xff]  ;;  %v376_v35 = vmul.f32 %v2154_v42, %v236_v23  ;;  %v135_v23 = vld [vmem:[%s2711_s0 + $0x188] sm:$0xff] }
  0x2a   :  { %835 = vmatpush1.bf16.msra.mxu0 %v2000_v36  ;;  %1983 = vmatpush1.bf16.msra.mxu1 %v2000_v36  ;;  %v434_v36 = vadd.f32 %v2174_v54, %v294_v24  ;;  %v445_v24 = vadd.f32 %v2101_v19, %v305_v3 }
  0x2b   :  { %836 = vmatprep.subr.bf16.mxu0 %v2006_v0  ;;  %1968 = vmatprep.subr.bf16.mxu1 %v2006_v0  ;;  %v442_v40 = vadd.f32 %v2174_v54, %v302_v28 }
  0x2e   :  { %837 = vmatpush1.bf16.msra.mxu0 %v2001_v37  ;;  %1984 = vmatpush1.bf16.msra.mxu1 %v2001_v37  ;;  %v436_v37 = vadd.f32 %v2174_v54, %v296_v25  ;;  %v507_v25 = vadd.f32 %v2101_v19, %v367_v4 }
  0x2f   :  { %838 = vmatprep.subr.bf16.mxu0 %v2006_v0  ;;  %1969 = vmatprep.subr.bf16.mxu1 %v2006_v0 }
  0x30   :  { %v624_v61 = vpack.c.bf16 %v436_v37, %v434_v36  ;;  %v661_v37 = vpack.c.bf16 %v509_v26, %v507_v25  ;;  %v175_v25 = vunpack.c.h.bf16 %v98_v10 }
  0x32   :  { %839 = vmatpush1.bf16.msra.mxu0 %v2002_v39  ;;  %1985 = vmatpush1.bf16.msra.mxu1 %v2002_v39  ;;  %v158_v39 = vunpack.c.l.bf16 %v2190_v1  ;;  %v303_v1 = vmul.f32 %v2096_v18, %v163_v51  ;;  %v232_v51 = vunpack.c.l.bf16 %v127_v13 }
  0x33   :  { %840 = vmatprep.subr.bf16.mxu0 %v2006_v0  ;;  %1970 = vmatprep.subr.bf16.mxu1 %v2006_v0 }
  0x34   :  { %v298_v57 = vmul.f32 %v2154_v42, %v158_v39  ;;  %v443_v20 = vadd.f32 %v2101_v19, %v303_v1  ;;  %v96_v39 = vld [vmem:[%s2711_s0 + $0x50] sm:$0xff]  ;;  %v372_v1 = vmul.f32 %v2154_v42, %v232_v51  ;;  %v133_v51 = vld [vmem:[%s2711_s0 + $0x178] sm:$0xff] }
  0x35   :  { %v171_v56 = vunpack.c.h.bf16 %v96_v39 }
  0x36   :  { %841 = vmatpush1.bf16.msra.mxu0 %v2003_v50  ;;  %1986 = vmatpush1.bf16.msra.mxu1 %v2003_v50  ;;  %v503_v50 = vadd.f32 %v2101_v19, %v363_v32  ;;  %v438_v9 = vadd.f32 %v2174_v54, %v298_v57  ;;  %v629_v36 = vpack.c.bf16 %v445_v24, %v443_v20 }
  0x37   :  { %842 = vmatprep.subr.bf16.mxu0 %v2006_v0  ;;  %1971 = vmatprep.subr.bf16.mxu1 %v2006_v0  ;;  %v311_v5 = vmul.f32 %v2096_v18, %v171_v56 }
  0x38   :  { %v659_v2 = vpack.c.bf16 %v505_v52, %v503_v50  ;;  %v626_v31 = vpack.c.bf16 %v440_v14, %v438_v9  ;;  %v230_v50 = vunpack.c.l.bf16 %v126_v8  ;;  %v377_v9 = vmul.f32 %v2096_v18, %v237_v60 }
  0x39   :  { %v170_v14 = vunpack.c.l.bf16 %v96_v39  ;;  %v451_v24 = vadd.f32 %v2101_v19, %v311_v5 }
  0x3a   :  { %843 = vmatpush1.bf16.msra.mxu0 %v2004_v59  ;;  %1987 = vmatpush1.bf16.msra.mxu1 %v2004_v59  ;;  %v362_v59 = vmul.f32 %v2154_v42, %v222_v46  ;;  %v128_v46 = vld [vmem:[%s2711_s0 + $0x150] sm:$0xff] }
  0x3b   :  { %844 = vmatprep.subr.bf16.mxu0 %v2006_v0  ;;  %1972 = vmatprep.subr.bf16.mxu1 %v2006_v0  ;;  %v657_v0 = vpack.c.bf16 %v501_v22, %v499_v21  ;;  %v167_v21 = vunpack.c.h.bf16 %v94_v6  ;;  %v169_v22 = vunpack.c.h.bf16 %v95_v7  ;;  %v313_v7 = vmul.f32 %v2096_v18, %v173_v58 }
  0x3c   :  { %v502_v15 = vadd.f32 %v2174_v54, %v362_v59  ;;  %v235_v59 = vunpack.c.h.bf16 %v128_v46 }
  0x3d   :  { %v309_v34 = vmul.f32 %v2096_v18, %v169_v22  ;;  %v512_v22 = vadd.f32 %v2174_v54, %v372_v1  ;;  %v453_v28 = vadd.f32 %v2101_v19, %v313_v7  ;;  %v245_v1 = vunpack.c.h.bf16 %v133_v51 }
  0x3e   :  { %845 = vmatpush1.bf16.msra.mxu0 %v2005_v17  ;;  %1988 = vmatpush1.bf16.msra.mxu1 %v2005_v17  ;;  %v228_v17 = vunpack.c.l.bf16 %v125_v43  ;;  %v506_v43 = vadd.f32 %v2174_v54, %v366_v30  ;;  %v375_v8 = vmul.f32 %v2096_v18, %v235_v59  ;;  %v517_v30 = vadd.f32 %v2101_v19, %v377_v9 }
  0x3f   :  { %v449_v53 = vadd.f32 %v2101_v19, %v309_v34 }
  0x40   :  { %v368_v32 = vmul.f32 %v2154_v42, %v228_v17  ;;  %v131_v17 = vld [vmem:[%s2711_s0 + $0x168] sm:$0xff] }
  0x41   :  { %847 = vmatmul.mubr.bf16.vlgmr.msra.gmra.mrb[0].mxu0 %v622_v27  ;;  %975 = vmatmul.mubr.bf16.vlgmr.msra.gmra.mrb[0].mxu1 %v654_v29  ;;  %v233_v27 = vunpack.c.h.bf16 %v127_v13  ;;  %v304_v29 = vmul.f32 %v2154_v42, %v164_v11  ;;  %v99_v11 = vld [vmem:[%s2711_s0 + $0x68] sm:$0xff]  ;;  %v240_v56 = vunpack.c.l.bf16 %v131_v17 }
  0x42   :  { %854 = vmatprep.mubr.bf16.mxu0 %v625_v33  ;;  %982 = vmatprep.mubr.bf16.mxu1 %v657_v0  ;;  %v658_v33 = vpack.c.bf16 %v504_v16, %v502_v15  ;;  %v307_v0 = vmul.f32 %v2096_v18, %v167_v21  ;;  %v508_v48 = vadd.f32 %v2174_v54, %v368_v32  ;;  %v172_v15 = vunpack.c.l.bf16 %v97_v45 }
  0x43   :  { %v373_v38 = vmul.f32 %v2096_v18, %v233_v27  ;;  %v444_v41 = vadd.f32 %v2174_v54, %v304_v29  ;;  %v234_v16 = vunpack.c.l.bf16 %v128_v46  ;;  %v177_v26 = vunpack.c.h.bf16 %v99_v11 }
  0x44   :  { %v447_v52 = vadd.f32 %v2101_v19, %v307_v0  ;;  %v660_v3 = vpack.c.bf16 %v508_v48, %v506_v43  ;;  %v239_v27 = vunpack.c.h.bf16 %v130_v12  ;;  %v515_v29 = vadd.f32 %v2101_v19, %v375_v8 }
  0x45   :  { %v513_v57 = vadd.f32 %v2101_v19, %v373_v38  ;;  %v310_v32 = vmul.f32 %v2154_v42, %v170_v14  ;;  %v374_v0 = vmul.f32 %v2154_v42, %v234_v16  ;;  %v317_v38 = vmul.f32 %v2096_v18, %v177_v26  ;;  %v102_v14 = vld [vmem:[%s2711_s0 + $0x80] sm:$0xff] }
  0x46   :  { %v631_v4 = vpack.c.bf16 %v449_v53, %v447_v52  ;;  %v379_v39 = vmul.f32 %v2096_v18, %v239_v27  ;;  %v174_v48 = vunpack.c.l.bf16 %v98_v10  ;;  %v516_v52 = vadd.f32 %v2174_v54, %v376_v35  ;;  %v134_v16 = vld [vmem:[%s2711_s0 + $0x180] sm:$0xff] }
  0x47   :  { %v663_v6 = vpack.c.bf16 %v513_v57, %v511_v55  ;;  %v450_v45 = vadd.f32 %v2174_v54, %v310_v32  ;;  %v514_v47 = vadd.f32 %v2174_v54, %v374_v0  ;;  %v176_v53 = vunpack.c.l.bf16 %v99_v11 }
  0x48   :  { %v238_v55 = vunpack.c.l.bf16 %v130_v12  ;;  %v457_v58 = vadd.f32 %v2101_v19, %v317_v38  ;;  %v519_v59 = vadd.f32 %v2101_v19, %v379_v39  ;;  %v380_v5 = vmul.f32 %v2154_v42, %v240_v56  ;;  %v137_v56 = vld [vmem:[%s2711_s0 + $0x198] sm:$0xff] }
  0x49   :  { %855 = vmatmul.mubr.bf16.gmra.mrb[4].mxu0 %v624_v61  ;;  %983 = vmatmul.mubr.bf16.gmra.mrb[4].mxu1 %v656_v62  ;;  %v306_v61 = vmul.f32 %v2154_v42, %v166_v44  ;;  %v308_v62 = vmul.f32 %v2154_v42, %v168_v49  ;;  %v100_v44 = vld [vmem:[%s2711_s0 + $0x70] sm:$0xff]  ;;  %v101_v49 = vld [vmem:[%s2711_s0 + $0x78] sm:$0xff]  ;;  %v664_v7 = vpack.c.bf16 %v516_v52, %v514_v47  ;;  %v244_v27 = vunpack.c.l.bf16 %v133_v51 }
  0x4a   :  { %862 = vmatprep.mubr.bf16.mxu0 %v627_v63  ;;  %990 = vmatprep.mubr.bf16.mxu1 %v659_v2  ;;  %v370_v63 = vmul.f32 %v2154_v42, %v230_v50  ;;  %v628_v2 = vpack.c.bf16 %v444_v41, %v442_v40  ;;  %v633_v40 = vpack.c.bf16 %v453_v28, %v451_v24  ;;  %v132_v50 = vld [vmem:[%s2711_s0 + $0x170] sm:$0xff]  ;;  %v179_v60 = vunpack.c.h.bf16 %v100_v44 }
  0x4b   :  { %v446_v13 = vadd.f32 %v2174_v54, %v306_v61  ;;  %v448_v20 = vadd.f32 %v2174_v54, %v308_v62  ;;  %v665_v41 = vpack.c.bf16 %v517_v30, %v515_v29  ;;  %v181_v62 = vunpack.c.h.bf16 %v101_v49 }
  0x4c   :  { %v510_v21 = vadd.f32 %v2174_v54, %v370_v63  ;;  %v243_v63 = vunpack.c.h.bf16 %v132_v50  ;;  %v319_v9 = vmul.f32 %v2096_v18, %v179_v60  ;;  %v520_v26 = vadd.f32 %v2174_v54, %v380_v5 }
  0x4d   :  { %v630_v34 = vpack.c.bf16 %v448_v20, %v446_v13  ;;  %v321_v11 = vmul.f32 %v2096_v18, %v181_v62  ;;  %v385_v13 = vmul.f32 %v2096_v18, %v245_v1  ;;  %v178_v20 = vunpack.c.l.bf16 %v100_v44 }
  0x4e   :  { %v383_v12 = vmul.f32 %v2096_v18, %v243_v63  ;;  %v459_v28 = vadd.f32 %v2101_v19, %v319_v9  ;;  %v183_v29 = vunpack.c.h.bf16 %v102_v14  ;;  %v384_v39 = vmul.f32 %v2154_v42, %v244_v27  ;;  %v139_v27 = vld [vmem:[%s2711_s0 + $0x1a8] sm:$0xff] }
  0x4f   :  { %v461_v32 = vadd.f32 %v2101_v19, %v321_v11  ;;  %v525_v0 = vadd.f32 %v2101_v19, %v385_v13  ;;  %v318_v35 = vmul.f32 %v2154_v42, %v178_v20  ;;  %v182_v52 = vunpack.c.l.bf16 %v102_v14  ;;  %v106_v20 = vld [vmem:[%s2711_s0 + $0xa0] sm:$0xff] }
  0x50   :  { %v248_v60 = vunpack.c.l.bf16 %v135_v23  ;;  %v253_v5 = vunpack.c.h.bf16 %v137_v56 }
  0x51   :  { %863 = vmatmul.mubr.bf16.gmra.mrb[8].mxu0 %v626_v31  ;;  %991 = vmatmul.mubr.bf16.gmra.mrb[8].mxu1 %v658_v33  ;;  %v241_v31 = vunpack.c.h.bf16 %v131_v17  ;;  %v312_v33 = vmul.f32 %v2154_v42, %v172_v15  ;;  %v103_v15 = vld [vmem:[%s2711_s0 + $0x88] sm:$0xff] }
  0x52   :  { %870 = vmatprep.mubr.bf16.mxu0 %v629_v36  ;;  %998 = vmatprep.mubr.bf16.mxu1 %v661_v37  ;;  %v662_v36 = vpack.c.bf16 %v512_v22, %v510_v21  ;;  %v315_v37 = vmul.f32 %v2096_v18, %v175_v25  ;;  %v180_v21 = vunpack.c.l.bf16 %v101_v49  ;;  %v242_v22 = vunpack.c.l.bf16 %v132_v50 }
  0x53   :  { %v381_v43 = vmul.f32 %v2096_v18, %v241_v31  ;;  %v452_v46 = vadd.f32 %v2174_v54, %v312_v33  ;;  %v185_v30 = vunpack.c.h.bf16 %v103_v15  ;;  %v247_v31 = vunpack.c.h.bf16 %v134_v16 }
  0x54   :  { %v455_v57 = vadd.f32 %v2101_v19, %v315_v37  ;;  %v523_v33 = vadd.f32 %v2101_v19, %v383_v12  ;;  %v382_v37 = vmul.f32 %v2154_v42, %v242_v22  ;;  %v458_v49 = vadd.f32 %v2174_v54, %v318_v35  ;;  %v138_v22 = vld [vmem:[%s2711_s0 + $0x1a0] sm:$0xff] }
  0x55   :  { %v521_v61 = vadd.f32 %v2101_v19, %v381_v43  ;;  %v325_v43 = vmul.f32 %v2096_v18, %v185_v30  ;;  %v387_v44 = vmul.f32 %v2096_v18, %v247_v31  ;;  %v388_v9 = vmul.f32 %v2154_v42, %v248_v60  ;;  %v141_v60 = vld [vmem:[%s2711_s0 + $0x1b8] sm:$0xff] }
  0x56   :  { %v635_v8 = vpack.c.bf16 %v457_v58, %v455_v57  ;;  %v522_v51 = vadd.f32 %v2174_v54, %v382_v37  ;;  %v524_v57 = vadd.f32 %v2174_v54, %v384_v39  ;;  %v184_v58 = vunpack.c.l.bf16 %v103_v15 }
  0x57   :  { %v667_v10 = vpack.c.bf16 %v521_v61, %v519_v59  ;;  %v246_v59 = vunpack.c.l.bf16 %v134_v16  ;;  %v465_v62 = vadd.f32 %v2101_v19, %v325_v43  ;;  %v527_v63 = vadd.f32 %v2101_v19, %v387_v44 }
  0x58   :  { %v668_v11 = vpack.c.bf16 %v524_v57, %v522_v51  ;;  %v528_v30 = vadd.f32 %v2174_v54, %v388_v9  ;;  %v252_v31 = vunpack.c.l.bf16 %v137_v56  ;;  %v190_v57 = vunpack.c.l.bf16 %v106_v20 }
  0x59   :  { %871 = vmatmul.mubr.bf16.gmra.mrb[12].mxu0 %v628_v2  ;;  %999 = vmatmul.mubr.bf16.gmra.mrb[12].mxu1 %v660_v3  ;;  %v314_v2 = vmul.f32 %v2154_v42, %v174_v48  ;;  %v316_v3 = vmul.f32 %v2154_v42, %v176_v53  ;;  %v104_v48 = vld [vmem:[%s2711_s0 + $0x90] sm:$0xff]  ;;  %v105_v53 = vld [vmem:[%s2711_s0 + $0x98] sm:$0xff]  ;;  %v261_v9 = vunpack.c.h.bf16 %v141_v60 }
  0x5a   :  { %878 = vmatprep.mubr.bf16.mxu0 %v631_v4  ;;  %1006 = vmatprep.mubr.bf16.mxu1 %v663_v6  ;;  %v378_v4 = vmul.f32 %v2154_v42, %v238_v55  ;;  %v632_v6 = vpack.c.bf16 %v452_v46, %v450_v45  ;;  %v637_v45 = vpack.c.bf16 %v461_v32, %v459_v28  ;;  %v136_v55 = vld [vmem:[%s2711_s0 + $0x190] sm:$0xff]  ;;  %v187_v1 = vunpack.c.h.bf16 %v104_v48 }
  0x5b   :  { %v454_v17 = vadd.f32 %v2174_v54, %v314_v2  ;;  %v456_v24 = vadd.f32 %v2174_v54, %v316_v3  ;;  %v669_v46 = vpack.c.bf16 %v525_v0, %v523_v33  ;;  %v189_v3 = vunpack.c.h.bf16 %v105_v53 }
  0x5c   :  { %v518_v25 = vadd.f32 %v2174_v54, %v378_v4  ;;  %v251_v4 = vunpack.c.h.bf16 %v136_v55  ;;  %v327_v13 = vmul.f32 %v2096_v18, %v187_v1  ;;  %v191_v33 = vunpack.c.h.bf16 %v106_v20 }
  0x5d   :  { %v634_v38 = vpack.c.bf16 %v456_v24, %v454_v17  ;;  %v329_v15 = vmul.f32 %v2096_v18, %v189_v3  ;;  %v393_v17 = vmul.f32 %v2096_v18, %v253_v5  ;;  %v186_v24 = vunpack.c.l.bf16 %v104_v48 }
  0x5e   :  { %v391_v16 = vmul.f32 %v2096_v18, %v251_v4  ;;  %v467_v32 = vadd.f32 %v2101_v19, %v327_v13  ;;  %v392_v44 = vmul.f32 %v2154_v42, %v252_v31  ;;  %v256_v1 = vunpack.c.l.bf16 %v139_v27  ;;  %v143_v31 = vld [vmem:[%s2711_s0 + $0x1c8] sm:$0xff] }
  0x5f   :  { %v469_v35 = vadd.f32 %v2101_v19, %v329_v15  ;;  %v533_v37 = vadd.f32 %v2101_v19, %v393_v17  ;;  %v326_v39 = vmul.f32 %v2154_v42, %v186_v24  ;;  %v110_v24 = vld [vmem:[%s2711_s0 + $0xc0] sm:$0xff] }
  0x60   :  { %v396_v13 = vmul.f32 %v2154_v42, %v256_v1  ;;  %v145_v1 = vld [vmem:[%s2711_s0 + $0x1d8] sm:$0xff] }
  0x61   :  { %879 = vmatmul.mubr.bf16.gmra.mrb[16].mxu0 %v630_v34  ;;  %1007 = vmatmul.mubr.bf16.gmra.mrb[16].mxu1 %v662_v36  ;;  %v249_v34 = vunpack.c.h.bf16 %v135_v23  ;;  %v320_v36 = vmul.f32 %v2154_v42, %v180_v21  ;;  %v107_v21 = vld [vmem:[%s2711_s0 + $0xa8] sm:$0xff] }
  0x62   :  { %886 = vmatprep.mubr.bf16.mxu0 %v633_v40  ;;  %1014 = vmatprep.mubr.bf16.mxu1 %v665_v41  ;;  %v666_v40 = vpack.c.bf16 %v520_v26, %v518_v25  ;;  %v323_v41 = vmul.f32 %v2096_v18, %v183_v29  ;;  %v188_v25 = vunpack.c.l.bf16 %v105_v53  ;;  %v250_v26 = vunpack.c.l.bf16 %v136_v55 }
  0x63   :  { %v389_v47 = vmul.f32 %v2096_v18, %v249_v34  ;;  %v460_v50 = vadd.f32 %v2174_v54, %v320_v36  ;;  %v193_v0 = vunpack.c.h.bf16 %v107_v21  ;;  %v255_v34 = vunpack.c.h.bf16 %v138_v22 }
  0x64   :  { %v463_v61 = vadd.f32 %v2101_v19, %v323_v41  ;;  %v531_v36 = vadd.f32 %v2101_v19, %v391_v16  ;;  %v390_v41 = vmul.f32 %v2154_v42, %v250_v26  ;;  %v466_v53 = vadd.f32 %v2174_v54, %v326_v39  ;;  %v142_v26 = vld [vmem:[%s2711_s0 + $0x1c0] sm:$0xff] }
  0x65   :  { %v529_v2 = vadd.f32 %v2101_v19, %v389_v47  ;;  %v333_v47 = vmul.f32 %v2096_v18, %v193_v0  ;;  %v395_v48 = vmul.f32 %v2096_v18, %v255_v34  ;;  %v536_v0 = vadd.f32 %v2174_v54, %v396_v13 }
  0x66   :  { %v639_v12 = vpack.c.bf16 %v465_v62, %v463_v61  ;;  %v530_v56 = vadd.f32 %v2174_v54, %v390_v41  ;;  %v532_v61 = vadd.f32 %v2174_v54, %v392_v44  ;;  %v192_v62 = vunpack.c.l.bf16 %v107_v21 }
  0x67   :  { %v671_v14 = vpack.c.bf16 %v529_v2, %v527_v63  ;;  %v254_v63 = vunpack.c.l.bf16 %v138_v22  ;;  %v473_v3 = vadd.f32 %v2101_v19, %v333_v47  ;;  %v535_v4 = vadd.f32 %v2101_v19, %v395_v48 }
  0x68   :  { %v672_v15 = vpack.c.bf16 %v532_v61, %v530_v56  ;;  %v260_v34 = vunpack.c.l.bf16 %v141_v60  ;;  %v198_v61 = vunpack.c.l.bf16 %v110_v24  ;;  %v269_v13 = vunpack.c.h.bf16 %v145_v1 }
  0x69   :  { %887 = vmatmul.mubr.bf16.gmra.mrb[20].mxu0 %v632_v6  ;;  %1015 = vmatmul.mubr.bf16.gmra.mrb[20].mxu1 %v664_v7  ;;  %v322_v6 = vmul.f32 %v2154_v42, %v182_v52  ;;  %v324_v7 = vmul.f32 %v2154_v42, %v184_v58  ;;  %v108_v52 = vld [vmem:[%s2711_s0 + $0xb0] sm:$0xff]  ;;  %v109_v58 = vld [vmem:[%s2711_s0 + $0xb8] sm:$0xff] }
  0x6a   :  { %894 = vmatprep.mubr.bf16.mxu0 %v635_v8  ;;  %1022 = vmatprep.mubr.bf16.mxu1 %v667_v10  ;;  %v386_v8 = vmul.f32 %v2154_v42, %v246_v59  ;;  %v636_v10 = vpack.c.bf16 %v460_v50, %v458_v49  ;;  %v641_v49 = vpack.c.bf16 %v469_v35, %v467_v32  ;;  %v140_v59 = vld [vmem:[%s2711_s0 + $0x1b0] sm:$0xff]  ;;  %v195_v5 = vunpack.c.h.bf16 %v108_v52 }
  0x6b   :  { %v462_v23 = vadd.f32 %v2174_v54, %v322_v6  ;;  %v464_v28 = vadd.f32 %v2174_v54, %v324_v7  ;;  %v673_v50 = vpack.c.bf16 %v533_v37, %v531_v36  ;;  %v197_v7 = vunpack.c.h.bf16 %v109_v58 }
  0x6c   :  { %v526_v29 = vadd.f32 %v2174_v54, %v386_v8  ;;  %v259_v8 = vunpack.c.h.bf16 %v140_v59  ;;  %v335_v17 = vmul.f32 %v2096_v18, %v195_v5  ;;  %v199_v36 = vunpack.c.h.bf16 %v110_v24 }
  0x6d   :  { %v638_v43 = vpack.c.bf16 %v464_v28, %v462_v23  ;;  %v337_v21 = vmul.f32 %v2096_v18, %v197_v7  ;;  %v401_v23 = vmul.f32 %v2096_v18, %v261_v9  ;;  %v194_v28 = vunpack.c.l.bf16 %v108_v52 }
  0x6e   :  { %v399_v22 = vmul.f32 %v2096_v18, %v259_v8  ;;  %v475_v35 = vadd.f32 %v2101_v19, %v335_v17  ;;  %v400_v48 = vmul.f32 %v2154_v42, %v260_v34  ;;  %v264_v5 = vunpack.c.l.bf16 %v143_v31  ;;  %v147_v34 = vld [vmem:[%s2711_s0 + $0x1e8] sm:$0xff] }
  0x6f   :  { %v477_v39 = vadd.f32 %v2101_v19, %v337_v21  ;;  %v541_v41 = vadd.f32 %v2101_v19, %v401_v23  ;;  %v334_v44 = vmul.f32 %v2154_v42, %v194_v28  ;;  %v114_v28 = vld [vmem:[%s2711_s0 + $0xe0] sm:$0xff] }
  0x70   :  { %v404_v17 = vmul.f32 %v2154_v42, %v264_v5  ;;  %v149_v5 = vld [vmem:[%s2711_s0 + $0x1f8] sm:$0xff] }
  0x71   :  { %895 = vmatmul.mubr.bf16.gmra.mrb[24].mxu0 %v634_v38  ;;  %1023 = vmatmul.mubr.bf16.gmra.mrb[24].mxu1 %v666_v40  ;;  %v257_v38 = vunpack.c.h.bf16 %v139_v27  ;;  %v328_v40 = vmul.f32 %v2154_v42, %v188_v25  ;;  %v111_v25 = vld [vmem:[%s2711_s0 + $0xc8] sm:$0xff] }
  0x72   :  { %902 = vmatprep.mubr.bf16.mxu0 %v637_v45  ;;  %1030 = vmatprep.mubr.bf16.mxu1 %v669_v46  ;;  %v670_v45 = vpack.c.bf16 %v528_v30, %v526_v29  ;;  %v331_v46 = vmul.f32 %v2096_v18, %v191_v33  ;;  %v196_v29 = vunpack.c.l.bf16 %v109_v58  ;;  %v258_v30 = vunpack.c.l.bf16 %v140_v59 }
  0x73   :  { %v397_v51 = vmul.f32 %v2096_v18, %v257_v38  ;;  %v468_v55 = vadd.f32 %v2174_v54, %v328_v40  ;;  %v201_v37 = vunpack.c.h.bf16 %v111_v25  ;;  %v263_v38 = vunpack.c.h.bf16 %v142_v26 }
  0x74   :  { %v471_v2 = vadd.f32 %v2101_v19, %v331_v46  ;;  %v539_v40 = vadd.f32 %v2101_v19, %v399_v22  ;;  %v398_v46 = vmul.f32 %v2154_v42, %v258_v30  ;;  %v474_v58 = vadd.f32 %v2174_v54, %v334_v44  ;;  %v146_v30 = vld [vmem:[%s2711_s0 + $0x1e0] sm:$0xff] }
  0x75   :  { %v537_v6 = vadd.f32 %v2101_v19, %v397_v51  ;;  %v341_v51 = vmul.f32 %v2096_v18, %v201_v37  ;;  %v403_v52 = vmul.f32 %v2096_v18, %v263_v38  ;;  %v544_v37 = vadd.f32 %v2174_v54, %v404_v17 }
  0x76   :  { %v643_v16 = vpack.c.bf16 %v473_v3, %v471_v2  ;;  %v538_v60 = vadd.f32 %v2174_v54, %v398_v46  ;;  %v540_v2 = vadd.f32 %v2174_v54, %v400_v48  ;;  %v200_v3 = vunpack.c.l.bf16 %v111_v25 }
  0x77   :  { %v675_v20 = vpack.c.bf16 %v537_v6, %v535_v4  ;;  %v262_v4 = vunpack.c.l.bf16 %v142_v26  ;;  %v481_v7 = vadd.f32 %v2101_v19, %v341_v51  ;;  %v543_v8 = vadd.f32 %v2101_v19, %v403_v52 }
  0x78   :  { %v676_v21 = vpack.c.bf16 %v540_v2, %v538_v60  ;;  %v268_v38 = vunpack.c.l.bf16 %v145_v1  ;;  %v206_v2 = vunpack.c.l.bf16 %v114_v28  ;;  %v277_v17 = vunpack.c.h.bf16 %v149_v5 }
  0x79   :  { %903 = vmatmul.mubr.bf16.gmra.mrb[28].mxu0 %v636_v10  ;;  %1031 = vmatmul.mubr.bf16.gmra.mrb[28].mxu1 %v668_v11  ;;  %v330_v10 = vmul.f32 %v2154_v42, %v190_v57  ;;  %v332_v11 = vmul.f32 %v2154_v42, %v192_v62  ;;  %v112_v57 = vld [vmem:[%s2711_s0 + $0xd0] sm:$0xff]  ;;  %v113_v62 = vld [vmem:[%s2711_s0 + $0xd8] sm:$0xff] }
  0x7a   :  { %910 = vmatprep.mubr.bf16.mxu0 %v639_v12  ;;  %1038 = vmatprep.mubr.bf16.mxu1 %v671_v14  ;;  %v394_v12 = vmul.f32 %v2154_v42, %v254_v63  ;;  %v640_v14 = vpack.c.bf16 %v468_v55, %v466_v53  ;;  %v645_v53 = vpack.c.bf16 %v477_v39, %v475_v35  ;;  %v144_v63 = vld [vmem:[%s2711_s0 + $0x1d0] sm:$0xff]  ;;  %v203_v9 = vunpack.c.h.bf16 %v112_v57 }
  0x7b   :  { %v470_v27 = vadd.f32 %v2174_v54, %v330_v10  ;;  %v472_v32 = vadd.f32 %v2174_v54, %v332_v11  ;;  %v677_v55 = vpack.c.bf16 %v541_v41, %v539_v40  ;;  %v205_v11 = vunpack.c.h.bf16 %v113_v62 }
  0x7c   :  { %v534_v33 = vadd.f32 %v2174_v54, %v394_v12  ;;  %v267_v12 = vunpack.c.h.bf16 %v144_v63  ;;  %v343_v23 = vmul.f32 %v2096_v18, %v203_v9  ;;  %v207_v40 = vunpack.c.h.bf16 %v114_v28 }
  0x7d   :  { %v642_v47 = vpack.c.bf16 %v472_v32, %v470_v27  ;;  %v345_v25 = vmul.f32 %v2096_v18, %v205_v11  ;;  %v409_v27 = vmul.f32 %v2096_v18, %v269_v13  ;;  %v202_v32 = vunpack.c.l.bf16 %v112_v57 }
  0x7e   :  { %v407_v26 = vmul.f32 %v2096_v18, %v267_v12  ;;  %v483_v39 = vadd.f32 %v2101_v19, %v343_v23  ;;  %v408_v52 = vmul.f32 %v2154_v42, %v268_v38  ;;  %v272_v9 = vunpack.c.l.bf16 %v147_v34 }
  0x7f   :  { %v485_v44 = vadd.f32 %v2101_v19, %v345_v25  ;;  %v549_v46 = vadd.f32 %v2101_v19, %v409_v27  ;;  %v342_v48 = vmul.f32 %v2154_v42, %v202_v32 }
  0x80   :  { %v412_v23 = vmul.f32 %v2154_v42, %v272_v9 }
  0x81   :  { %911 = vmatmul.mubr.bf16.gmra.mrb[32].mxu0 %v638_v43  ;;  %1039 = vmatmul.mubr.bf16.gmra.mrb[32].mxu1 %v670_v45  ;;  %v265_v43 = vunpack.c.h.bf16 %v143_v31  ;;  %v336_v45 = vmul.f32 %v2154_v42, %v196_v29  ;;  %v115_v29 = vld [vmem:[%s2711_s0 + $0xe8] sm:$0xff] }
  0x82   :  { %918 = vmatprep.mubr.bf16.mxu0 %v641_v49  ;;  %1046 = vmatprep.mubr.bf16.mxu1 %v673_v50  ;;  %v674_v49 = vpack.c.bf16 %v536_v0, %v534_v33  ;;  %v339_v50 = vmul.f32 %v2096_v18, %v199_v36  ;;  %v204_v33 = vunpack.c.l.bf16 %v113_v62  ;;  %v266_v0 = vunpack.c.l.bf16 %v144_v63 }
  0x83   :  { %v405_v56 = vmul.f32 %v2096_v18, %v265_v43  ;;  %v476_v59 = vadd.f32 %v2174_v54, %v336_v45  ;;  %v209_v41 = vunpack.c.h.bf16 %v115_v29  ;;  %v271_v43 = vunpack.c.h.bf16 %v146_v30 }
  0x84   :  { %v479_v6 = vadd.f32 %v2101_v19, %v339_v50  ;;  %v547_v45 = vadd.f32 %v2101_v19, %v407_v26  ;;  %v406_v50 = vmul.f32 %v2154_v42, %v266_v0  ;;  %v482_v62 = vadd.f32 %v2174_v54, %v342_v48 }
  0x85   :  { %v545_v10 = vadd.f32 %v2101_v19, %v405_v56  ;;  %v349_v56 = vmul.f32 %v2096_v18, %v209_v41  ;;  %v411_v57 = vmul.f32 %v2096_v18, %v271_v43 }
  0x86   :  { %v647_v22 = vpack.c.bf16 %v481_v7, %v479_v6  ;;  %v546_v1 = vadd.f32 %v2174_v54, %v406_v50  ;;  %v548_v6 = vadd.f32 %v2174_v54, %v408_v52  ;;  %v208_v7 = vunpack.c.l.bf16 %v115_v29 }
  0x87   :  { %v679_v24 = vpack.c.bf16 %v545_v10, %v543_v8  ;;  %v270_v8 = vunpack.c.l.bf16 %v146_v30  ;;  %v489_v11 = vadd.f32 %v2101_v19, %v349_v56  ;;  %v551_v12 = vadd.f32 %v2101_v19, %v411_v57 }
  0x88   :  { %v680_v25 = vpack.c.bf16 %v548_v6, %v546_v1 }
  0x89   :  { %919 = vmatmul.mubr.bf16.gmra.mrb[36].mxu0 %v640_v14  ;;  %1047 = vmatmul.mubr.bf16.gmra.mrb[36].mxu1 %v672_v15  ;;  %v338_v14 = vmul.f32 %v2154_v42, %v198_v61  ;;  %v340_v15 = vmul.f32 %v2154_v42, %v200_v3  ;;  %v116_v61 = vld [vmem:[%s2711_s0 + $0xf0] sm:$0xff]  ;;  %v117_v3 = vld [vmem:[%s2711_s0 + $0xf8] sm:$0xff] }
  0x8a   :  { %926 = vmatprep.mubr.bf16.mxu0 %v643_v16  ;;  %1054 = vmatprep.mubr.bf16.mxu1 %v675_v20  ;;  %v402_v16 = vmul.f32 %v2154_v42, %v262_v4  ;;  %v644_v20 = vpack.c.bf16 %v476_v59, %v474_v58  ;;  %v649_v58 = vpack.c.bf16 %v485_v44, %v483_v39  ;;  %v148_v4 = vld [vmem:[%s2711_s0 + $0x1f0] sm:$0xff]  ;;  %v211_v13 = vunpack.c.h.bf16 %v116_v61 }
  0x8b   :  { %v478_v31 = vadd.f32 %v2174_v54, %v338_v14  ;;  %v480_v35 = vadd.f32 %v2174_v54, %v340_v15  ;;  %v681_v59 = vpack.c.bf16 %v549_v46, %v547_v45  ;;  %v213_v15 = vunpack.c.h.bf16 %v117_v3 }
  0x8c   :  { %v542_v36 = vadd.f32 %v2174_v54, %v402_v16  ;;  %v275_v16 = vunpack.c.h.bf16 %v148_v4  ;;  %v351_v27 = vmul.f32 %v2096_v18, %v211_v13  ;;  %v274_v38 = vunpack.c.l.bf16 %v148_v4 }
  0x8d   :  { %v646_v51 = vpack.c.bf16 %v480_v35, %v478_v31  ;;  %v353_v29 = vmul.f32 %v2096_v18, %v213_v15  ;;  %v417_v31 = vmul.f32 %v2096_v18, %v277_v17  ;;  %v210_v35 = vunpack.c.l.bf16 %v116_v61 }
  0x8e   :  { %v415_v30 = vmul.f32 %v2096_v18, %v275_v16  ;;  %v276_v39 = vunpack.c.l.bf16 %v149_v5 }
  0x8f   :  { %v557_v41 = vadd.f32 %v2101_v19, %v417_v31  ;;  %v350_v44 = vmul.f32 %v2154_v42, %v210_v35 }
  0x90   :  { %v416_v48 = vmul.f32 %v2154_v42, %v276_v39 }
  0x91   :  { %927 = vmatmul.mubr.bf16.gmra.mrb[40].mxu0 %v642_v47  ;;  %1055 = vmatmul.mubr.bf16.gmra.mrb[40].mxu1 %v674_v49  ;;  %v273_v47 = vunpack.c.h.bf16 %v147_v34  ;;  %v344_v49 = vmul.f32 %v2154_v42, %v204_v33  ;;  %v552_v34 = vadd.f32 %v2174_v54, %v412_v23 }
  0x92   :  { %934 = vmatprep.mubr.bf16.mxu0 %v645_v53  ;;  %1062 = vmatprep.mubr.bf16.mxu1 %v677_v55  ;;  %v678_v53 = vpack.c.bf16 %v544_v37, %v542_v36  ;;  %v347_v55 = vmul.f32 %v2096_v18, %v207_v40  ;;  %v491_v36 = vadd.f32 %v2101_v19, %v351_v27  ;;  %v212_v37 = vunpack.c.l.bf16 %v117_v3 }
  0x93   :  { %v413_v60 = vmul.f32 %v2096_v18, %v273_v47  ;;  %v484_v63 = vadd.f32 %v2174_v54, %v344_v49  ;;  %v493_v18 = vadd.f32 %v2101_v19, %v353_v29  ;;  %v555_v40 = vadd.f32 %v2101_v19, %v415_v30 }
  0x94   :  { %v487_v10 = vadd.f32 %v2101_v19, %v347_v55  ;;  %v352_v46 = vmul.f32 %v2154_v42, %v212_v37  ;;  %v414_v47 = vmul.f32 %v2154_v42, %v274_v38 }
  0x95   :  { %v553_v14 = vadd.f32 %v2101_v19, %v413_v60  ;;  %v653_v49 = vpack.c.bf16 %v493_v18, %v491_v36  ;;  %v685_v50 = vpack.c.bf16 %v557_v41, %v555_v40 }
  0x96   :  { %v651_v26 = vpack.c.bf16 %v489_v11, %v487_v10  ;;  %v492_v52 = vadd.f32 %v2174_v54, %v352_v46  ;;  %v554_v19 = vadd.f32 %v2174_v54, %v414_v47 }
  0x97   :  { %v683_v28 = vpack.c.bf16 %v553_v14, %v551_v12 }
  0x99   :  { %935 = vmatmul.mubr.bf16.gmra.mrb[44].mxu0 %v644_v20  ;;  %1063 = vmatmul.mubr.bf16.gmra.mrb[44].mxu1 %v676_v21  ;;  %v346_v20 = vmul.f32 %v2154_v42, %v206_v2  ;;  %v348_v21 = vmul.f32 %v2154_v42, %v208_v7 }
  0x9a   :  { %942 = vmatprep.mubr.bf16.mxu0 %v647_v22  ;;  %1070 = vmatprep.mubr.bf16.mxu1 %v679_v24  ;;  %v410_v22 = vmul.f32 %v2154_v42, %v270_v8  ;;  %v648_v24 = vpack.c.bf16 %v484_v63, %v482_v62 }
  0x9b   :  { %v486_v32 = vadd.f32 %v2174_v54, %v346_v20  ;;  %v488_v33 = vadd.f32 %v2174_v54, %v348_v21 }
  0x9c   :  { %v550_v0 = vadd.f32 %v2174_v54, %v410_v22 }
  0x9d   :  { %v650_v43 = vpack.c.bf16 %v488_v33, %v486_v32 }
  0x9e   :  { %v682_v45 = vpack.c.bf16 %v552_v34, %v550_v0 }
  0xa1   :  { %943 = vmatmul.mubr.bf16.gmra.mrb[48].mxu0 %v646_v51  ;;  %1071 = vmatmul.mubr.bf16.gmra.mrb[48].mxu1 %v678_v53  ;;  %v490_v51 = vadd.f32 %v2174_v54, %v350_v44  ;;  %v556_v53 = vadd.f32 %v2174_v54, %v416_v48 }
  0xa2   :  { %950 = vmatprep.mubr.bf16.mxu0 %v649_v58  ;;  %1078 = vmatprep.mubr.bf16.mxu1 %v681_v59 }
  0xa3   :  { %v652_v55 = vpack.c.bf16 %v492_v52, %v490_v51  ;;  %v684_v56 = vpack.c.bf16 %v556_v53, %v554_v19 }
  0xa9   :  { %951 = vmatmul.mubr.bf16.gmra.mrb[52].mxu0 %v648_v24  ;;  %1079 = vmatmul.mubr.bf16.gmra.mrb[52].mxu1 %v680_v25 }
  0xaa   :  { %958 = vmatprep.mubr.bf16.mxu0 %v651_v26  ;;  %1086 = vmatprep.mubr.bf16.mxu1 %v683_v28 }
  0xb1   :  { %959 = vmatmul.mubr.bf16.gmra.mrb[56].mxu0 %v650_v43  ;;  %1087 = vmatmul.mubr.bf16.gmra.mrb[56].mxu1 %v682_v45 }
  0xb2   :  { %966 = vmatprep.mubr.bf16.mxu0 %v653_v49  ;;  %1094 = vmatprep.mubr.bf16.mxu1 %v685_v50 }
  0xb9   :  { %967 = vmatmul.mubr.bf16.gmra.mrb[60].mxu0 %v652_v55  ;;  %1095 = vmatmul.mubr.bf16.gmra.mrb[60].mxu1 %v684_v56 }
 0x114   :  { %v848_v57 = vpop.f32.mrb[0].mxu0  ;;  %v976_v42 = vpop.f32.mrb[0].mxu1 }
 0x115   :  { %v850_v58 = vpop.f32.mrb[1].mxu0  ;;  %v978_v59 = vpop.f32.mrb[1].mxu1 }
 0x116   :  { %v851_v60 = vpop.f32.mrb[2].mxu0  ;;  %v979_v61 = vpop.f32.mrb[2].mxu1 }
 0x117   :  { %v1769_v62 = vpack.c.bf16 %v851_v60, %v848_v57  ;;  %v1849_v63 = vpack.c.bf16 %v979_v61, %v976_v42  ;;  %v853_v1 = vpop.f32.mrb[3].mxu0  ;;  %v981_v2 = vpop.f32.mrb[3].mxu1 }
 0x119   :  { %1770 = vst [vmem:[%s2714_s4] sm:$0xff] %v1769_v62   ;;  %1941 = vst [vmem:[%s2714_s4 + $0x80] sm:$0xff] %v1849_v63  }
 0x11c   :  { %v856_v54 = vpop.f32.mrb[4].mxu0  ;;  %v984_v3 = vpop.f32.mrb[4].mxu1 }
 0x11d   :  { %v858_v4 = vpop.f32.mrb[5].mxu0  ;;  %v986_v5 = vpop.f32.mrb[5].mxu1 }
 0x11e   :  { %v859_v6 = vpop.f32.mrb[6].mxu0  ;;  %v987_v7 = vpop.f32.mrb[6].mxu1 }
 0x11f   :  { %v1774_v8 = vpack.c.bf16 %v859_v6, %v856_v54  ;;  %v1854_v9 = vpack.c.bf16 %v987_v7, %v984_v3  ;;  %v861_v10 = vpop.f32.mrb[7].mxu0  ;;  %v989_v11 = vpop.f32.mrb[7].mxu1 }
 0x121   :  { %1926 = vst [vmem:[%s2714_s4 + $0x8] sm:$0xff] %v1774_v8   ;;  %1942 = vst [vmem:[%s2714_s4 + $0x88] sm:$0xff] %v1854_v9  }
 0x124   :  { %v864_v12 = vpop.f32.mrb[8].mxu0  ;;  %v992_v13 = vpop.f32.mrb[8].mxu1 }
 0x125   :  { %v866_v14 = vpop.f32.mrb[9].mxu0  ;;  %v994_v15 = vpop.f32.mrb[9].mxu1 }
 0x126   :  { %v867_v16 = vpop.f32.mrb[10].mxu0  ;;  %v995_v17 = vpop.f32.mrb[10].mxu1 }
 0x127   :  { %v1779_v20 = vpack.c.bf16 %v867_v16, %v864_v12  ;;  %v1859_v21 = vpack.c.bf16 %v995_v17, %v992_v13  ;;  %v869_v22 = vpop.f32.mrb[11].mxu0  ;;  %v997_v23 = vpop.f32.mrb[11].mxu1 }
 0x129   :  { %1927 = vst [vmem:[%s2714_s4 + $0x10] sm:$0xff] %v1779_v20   ;;  %1943 = vst [vmem:[%s2714_s4 + $0x90] sm:$0xff] %v1859_v21  }
 0x12c   :  { %v872_v24 = vpop.f32.mrb[12].mxu0  ;;  %v1000_v25 = vpop.f32.mrb[12].mxu1 }
 0x12d   :  { %v874_v26 = vpop.f32.mrb[13].mxu0  ;;  %v1002_v27 = vpop.f32.mrb[13].mxu1 }
 0x12e   :  { %v875_v28 = vpop.f32.mrb[14].mxu0  ;;  %v1003_v29 = vpop.f32.mrb[14].mxu1 }
 0x12f   :  { %v1784_v30 = vpack.c.bf16 %v875_v28, %v872_v24  ;;  %v1864_v31 = vpack.c.bf16 %v1003_v29, %v1000_v25  ;;  %v877_v32 = vpop.f32.mrb[15].mxu0  ;;  %v1005_v33 = vpop.f32.mrb[15].mxu1 }
 0x131   :  { %1928 = vst [vmem:[%s2714_s4 + $0x18] sm:$0xff] %v1784_v30   ;;  %1944 = vst [vmem:[%s2714_s4 + $0x98] sm:$0xff] %v1864_v31  }
 0x134   :  { %v880_v0 = vpop.f32.mrb[16].mxu0  ;;  %v1008_v34 = vpop.f32.mrb[16].mxu1 }
 0x135   :  { %v882_v35 = vpop.f32.mrb[17].mxu0  ;;  %v1010_v36 = vpop.f32.mrb[17].mxu1 }
 0x136   :  { %v883_v37 = vpop.f32.mrb[18].mxu0  ;;  %v1011_v38 = vpop.f32.mrb[18].mxu1 }
 0x137   :  { %v1789_v39 = vpack.c.bf16 %v883_v37, %v880_v0  ;;  %v1869_v18 = vpack.c.bf16 %v1011_v38, %v1008_v34  ;;  %v885_v40 = vpop.f32.mrb[19].mxu0  ;;  %v1013_v41 = vpop.f32.mrb[19].mxu1 }
 0x139   :  { %1929 = vst [vmem:[%s2714_s4 + $0x20] sm:$0xff] %v1789_v39   ;;  %1945 = vst [vmem:[%s2714_s4 + $0xa0] sm:$0xff] %v1869_v18  }
 0x13c   :  { %v888_v43 = vpop.f32.mrb[20].mxu0  ;;  %v1016_v44 = vpop.f32.mrb[20].mxu1 }
 0x13d   :  { %v890_v45 = vpop.f32.mrb[21].mxu0  ;;  %v1018_v46 = vpop.f32.mrb[21].mxu1 }
 0x13e   :  { %v891_v47 = vpop.f32.mrb[22].mxu0  ;;  %v1019_v48 = vpop.f32.mrb[22].mxu1 }
 0x13f   :  { %v1794_v49 = vpack.c.bf16 %v891_v47, %v888_v43  ;;  %v1874_v50 = vpack.c.bf16 %v1019_v48, %v1016_v44  ;;  %v893_v51 = vpop.f32.mrb[23].mxu0  ;;  %v1021_v52 = vpop.f32.mrb[23].mxu1 }
 0x141   :  { %1930 = vst [vmem:[%s2714_s4 + $0x28] sm:$0xff] %v1794_v49   ;;  %1946 = vst [vmem:[%s2714_s4 + $0xa8] sm:$0xff] %v1874_v50  }
 0x144   :  { %v896_v19 = vpop.f32.mrb[24].mxu0  ;;  %v1024_v53 = vpop.f32.mrb[24].mxu1 }
 0x145   :  { %v898_v55 = vpop.f32.mrb[25].mxu0  ;;  %v1026_v56 = vpop.f32.mrb[25].mxu1 }
 0x146   :  { %v899_v57 = vpop.f32.mrb[26].mxu0  ;;  %v1027_v42 = vpop.f32.mrb[26].mxu1 }
 0x147   :  { %v1799_v58 = vpack.c.bf16 %v899_v57, %v896_v19  ;;  %v1879_v59 = vpack.c.bf16 %v1027_v42, %v1024_v53  ;;  %v901_v60 = vpop.f32.mrb[27].mxu0  ;;  %v1029_v61 = vpop.f32.mrb[27].mxu1 }
 0x149   :  { %1931 = vst [vmem:[%s2714_s4 + $0x30] sm:$0xff] %v1799_v58   ;;  %1947 = vst [vmem:[%s2714_s4 + $0xb0] sm:$0xff] %v1879_v59  }
 0x14c   :  { %v904_v62 = vpop.f32.mrb[28].mxu0  ;;  %v1032_v63 = vpop.f32.mrb[28].mxu1 }
 0x14d   :  { %v906_v1 = vpop.f32.mrb[29].mxu0  ;;  %v1034_v2 = vpop.f32.mrb[29].mxu1 }
 0x14e   :  { %v907_v54 = vpop.f32.mrb[30].mxu0  ;;  %v1035_v3 = vpop.f32.mrb[30].mxu1 }
 0x14f   :  { %v1804_v4 = vpack.c.bf16 %v907_v54, %v904_v62  ;;  %v1884_v5 = vpack.c.bf16 %v1035_v3, %v1032_v63  ;;  %v909_v6 = vpop.f32.mrb[31].mxu0  ;;  %v1037_v7 = vpop.f32.mrb[31].mxu1 }
 0x151   :  { %1932 = vst [vmem:[%s2714_s4 + $0x38] sm:$0xff] %v1804_v4   ;;  %1948 = vst [vmem:[%s2714_s4 + $0xb8] sm:$0xff] %v1884_v5  }
 0x154   :  { %v912_v8 = vpop.f32.mrb[32].mxu0  ;;  %v1040_v9 = vpop.f32.mrb[32].mxu1 }
 0x155   :  { %v914_v10 = vpop.f32.mrb[33].mxu0  ;;  %v1042_v11 = vpop.f32.mrb[33].mxu1 }
 0x156   :  { %v915_v12 = vpop.f32.mrb[34].mxu0  ;;  %v1043_v13 = vpop.f32.mrb[34].mxu1 }
 0x157   :  { %v1809_v14 = vpack.c.bf16 %v915_v12, %v912_v8  ;;  %v1889_v15 = vpack.c.bf16 %v1043_v13, %v1040_v9  ;;  %v917_v16 = vpop.f32.mrb[35].mxu0  ;;  %v1045_v17 = vpop.f32.mrb[35].mxu1 }
 0x159   :  { %1933 = vst [vmem:[%s2714_s4 + $0x40] sm:$0xff] %v1809_v14   ;;  %1949 = vst [vmem:[%s2714_s4 + $0xc0] sm:$0xff] %v1889_v15  }
 0x15c   :  { %v920_v20 = vpop.f32.mrb[36].mxu0  ;;  %v1048_v21 = vpop.f32.mrb[36].mxu1 }
 0x15d   :  { %v922_v22 = vpop.f32.mrb[37].mxu0  ;;  %v1050_v23 = vpop.f32.mrb[37].mxu1 }
 0x15e   :  { %v923_v24 = vpop.f32.mrb[38].mxu0  ;;  %v1051_v25 = vpop.f32.mrb[38].mxu1 }
 0x15f   :  { %v1814_v26 = vpack.c.bf16 %v923_v24, %v920_v20  ;;  %v1894_v27 = vpack.c.bf16 %v1051_v25, %v1048_v21  ;;  %v925_v28 = vpop.f32.mrb[39].mxu0  ;;  %v1053_v29 = vpop.f32.mrb[39].mxu1 }
 0x161   :  { %1934 = vst [vmem:[%s2714_s4 + $0x48] sm:$0xff] %v1814_v26   ;;  %1950 = vst [vmem:[%s2714_s4 + $0xc8] sm:$0xff] %v1894_v27  }
 0x164   :  { %v928_v30 = vpop.f32.mrb[40].mxu0  ;;  %v1056_v31 = vpop.f32.mrb[40].mxu1 }
 0x165   :  { %v930_v32 = vpop.f32.mrb[41].mxu0  ;;  %v1058_v33 = vpop.f32.mrb[41].mxu1 }
 0x166   :  { %v931_v0 = vpop.f32.mrb[42].mxu0  ;;  %v1059_v34 = vpop.f32.mrb[42].mxu1 }
 0x167   :  { %v1819_v35 = vpack.c.bf16 %v931_v0, %v928_v30  ;;  %v1899_v36 = vpack.c.bf16 %v1059_v34, %v1056_v31  ;;  %v933_v37 = vpop.f32.mrb[43].mxu0  ;;  %v1061_v38 = vpop.f32.mrb[43].mxu1 }
 0x169   :  { %1935 = vst [vmem:[%s2714_s4 + $0x50] sm:$0xff] %v1819_v35   ;;  %1951 = vst [vmem:[%s2714_s4 + $0xd0] sm:$0xff] %v1899_v36  }
 0x16c   :  { %v936_v39 = vpop.f32.mrb[44].mxu0  ;;  %v1064_v18 = vpop.f32.mrb[44].mxu1 }
 0x16d   :  { %v938_v40 = vpop.f32.mrb[45].mxu0  ;;  %v1066_v41 = vpop.f32.mrb[45].mxu1 }
 0x16e   :  { %v939_v43 = vpop.f32.mrb[46].mxu0  ;;  %v1067_v44 = vpop.f32.mrb[46].mxu1 }
 0x16f   :  { %v1824_v45 = vpack.c.bf16 %v939_v43, %v936_v39  ;;  %v1904_v46 = vpack.c.bf16 %v1067_v44, %v1064_v18  ;;  %v941_v47 = vpop.f32.mrb[47].mxu0  ;;  %v1069_v48 = vpop.f32.mrb[47].mxu1 }
 0x171   :  { %1936 = vst [vmem:[%s2714_s4 + $0x58] sm:$0xff] %v1824_v45   ;;  %1952 = vst [vmem:[%s2714_s4 + $0xd8] sm:$0xff] %v1904_v46  }
 0x174   :  { %v944_v49 = vpop.f32.mrb[48].mxu0  ;;  %v1072_v50 = vpop.f32.mrb[48].mxu1 }
 0x175   :  { %v946_v51 = vpop.f32.mrb[49].mxu0  ;;  %v1074_v52 = vpop.f32.mrb[49].mxu1 }
 0x176   :  { %v947_v19 = vpop.f32.mrb[50].mxu0  ;;  %v1075_v53 = vpop.f32.mrb[50].mxu1 }
 0x177   :  { %v1829_v55 = vpack.c.bf16 %v947_v19, %v944_v49  ;;  %v1909_v56 = vpack.c.bf16 %v1075_v53, %v1072_v50  ;;  %v949_v57 = vpop.f32.mrb[51].mxu0  ;;  %v1077_v42 = vpop.f32.mrb[51].mxu1 }
 0x179   :  { %1937 = vst [vmem:[%s2714_s4 + $0x60] sm:$0xff] %v1829_v55   ;;  %1953 = vst [vmem:[%s2714_s4 + $0xe0] sm:$0xff] %v1909_v56  }
 0x17c   :  { %v952_v58 = vpop.f32.mrb[52].mxu0  ;;  %v1080_v59 = vpop.f32.mrb[52].mxu1 }
 0x17d   :  { %v954_v60 = vpop.f32.mrb[53].mxu0  ;;  %v1082_v61 = vpop.f32.mrb[53].mxu1 }
 0x17e   :  { %v955_v62 = vpop.f32.mrb[54].mxu0  ;;  %v1083_v63 = vpop.f32.mrb[54].mxu1 }
 0x17f   :  { %v1834_v1 = vpack.c.bf16 %v955_v62, %v952_v58  ;;  %v1914_v2 = vpack.c.bf16 %v1083_v63, %v1080_v59  ;;  %v957_v54 = vpop.f32.mrb[55].mxu0  ;;  %v1085_v3 = vpop.f32.mrb[55].mxu1 }
 0x181   :  { %1938 = vst [vmem:[%s2714_s4 + $0x68] sm:$0xff] %v1834_v1   ;;  %1954 = vst [vmem:[%s2714_s4 + $0xe8] sm:$0xff] %v1914_v2  }
 0x184   :  { %v960_v4 = vpop.f32.mrb[56].mxu0  ;;  %v1088_v5 = vpop.f32.mrb[56].mxu1 }
 0x185   :  { %v962_v6 = vpop.f32.mrb[57].mxu0  ;;  %v1090_v7 = vpop.f32.mrb[57].mxu1 }
 0x186   :  { %v963_v8 = vpop.f32.mrb[58].mxu0  ;;  %v1091_v9 = vpop.f32.mrb[58].mxu1 }
 0x187   :  { %v1839_v10 = vpack.c.bf16 %v963_v8, %v960_v4  ;;  %v1919_v11 = vpack.c.bf16 %v1091_v9, %v1088_v5  ;;  %v965_v12 = vpop.f32.mrb[59].mxu0  ;;  %v1093_v13 = vpop.f32.mrb[59].mxu1 }
 0x189   :  { %1939 = vst [vmem:[%s2714_s4 + $0x70] sm:$0xff] %v1839_v10   ;;  %1955 = vst [vmem:[%s2714_s4 + $0xf0] sm:$0xff] %v1919_v11  }
 0x18c   :  { %v968_v14 = vpop.f32.mrb[60].mxu0  ;;  %v1096_v15 = vpop.f32.mrb[60].mxu1 }
 0x18d   :  { %v970_v16 = vpop.f32.mrb[61].mxu0  ;;  %v1098_v17 = vpop.f32.mrb[61].mxu1 }
 0x18e   :  { %v971_v20 = vpop.f32.mrb[62].mxu0  ;;  %v1099_v21 = vpop.f32.mrb[62].mxu1 }
 0x18f   :  { %v1844_v22 = vpack.c.bf16 %v971_v20, %v968_v14  ;;  %v1924_v23 = vpack.c.bf16 %v1099_v21, %v1096_v15  ;;  %v973_v24 = vpop.f32.mrb[63].mxu0  ;;  %v1101_v25 = vpop.f32.mrb[63].mxu1 }
 0x191   :  { %1940 = vst [vmem:[%s2714_s4 + $0x78] sm:$0xff] %v1844_v22   ;;  %1956 = vst [vmem:[%s2714_s4 + $0xf8] sm:$0xff] %v1924_v23  }

</bundles_post_ra>
